<compile_context>
chip_gen: v7x
topology: tpu7x:2x2x1
jax: 0.10.0
libtpu: 0.0.40
codegen_flags: <defaults>
</compile_context>

<pallas_src>
import functools

import jax
import jax.numpy as jnp
from jax.experimental import pallas as pl
from jax.experimental.pallas import tpu as pltpu


def _round_up(x, m):
    return (x + m - 1) // m * m


# ----------------------------------------------------------------------------
# Fused Fire kernel (one grid step per batch element)
# ----------------------------------------------------------------------------
def _fire_kernel(x_ref, mask_ref, wsq_ref, bsq_ref, wcomb_ref, bcomb_ref,
                 o_ref, *, Wp, Lout):
    # x_ref    : (1, Cin, Lx)  spatially zero-padded input, flattened, lane-padded
    # mask_ref : (1, Lx)       1.0 on interior padded positions, 0.0 on halo/tail
    # wsq_ref  : (Csq, Cin)    bsq_ref  : (Csq, 1)
    # wcomb_ref: (Cout, 9*Csq) bcomb_ref: (Cout, 1)
    # o_ref    : (1, Cout, Lout)   anchor layout, Lout = H * Wp
    x = x_ref[0]                                                  # (Cin, Lx)

    # squeeze 1x1 + bias + ReLU; mask forces the padding halo back to 0
    sq = jnp.dot(wsq_ref[...], x, preferred_element_type=jnp.float32)
    sq = jnp.maximum(sq + bsq_ref[...], 0.0) * mask_ref[...]      # (Csq, Lx)

    # im2col: tap (ky, kx) of the 3x3 window is a pure lane shift by ky*Wp+kx
    taps = []
    for ky in range(3):
        for kx in range(3):
            off = ky * Wp + kx
            taps.append(sq[:, off:off + Lout])                    # (Csq, Lout)
    col = jnp.concatenate(taps, axis=0)                           # (9*Csq, Lout)

    # one matmul = expand1x1 (folded into centre tap) + expand3x3 + concat
    out = jnp.dot(wcomb_ref[...], col, preferred_element_type=jnp.float32)
    out = jnp.maximum(out + bcomb_ref[...], 0.0)                  # (Cout, Lout)
    o_ref[0] = out


# ----------------------------------------------------------------------------
# Wrapper
# ----------------------------------------------------------------------------
@jax.jit
def fire_forward(x_nchw, w_sq, b_sq, w_comb, b_comb):
    """Fire forward pass.
      x_nchw : (B, Cin, H, W) float32
      w_sq   : (Csq, Cin)         b_sq   : (Csq, 1)
      w_comb : (C1+C3, 9*Csq)     b_comb : (C1+C3, 1)
               (expand1x1 folded into the centre tap; taps ordered ky*3+kx)
    Returns (B, C1+C3, H, W) matching torch.cat([expand1x1, expand3x3], 1)."""
    B, Cin, H, W = x_nchw.shape
    Csq = w_sq.shape[0]
    Cout = w_comb.shape[0]
    Hp, Wp = H + 2, W + 2
    n_pad = Hp * Wp
    Lout = H * Wp                                   # anchors y*Wp+x cover all outputs
    Lx = _round_up(max(n_pad, Lout + 2 * Wp + 2), 128)

    # Layout glue (no transposes): spatial zero-pad, flatten, pad lane axis.
    x_pad = jnp.pad(x_nchw, ((0, 0), (0, 0), (1, 1), (1, 1)))     # (B,Cin,Hp,Wp)
    x_flat = jnp.pad(x_pad.reshape(B, Cin, n_pad),
                     ((0, 0), (0, 0), (0, Lx - n_pad)))           # (B,Cin,Lx)
    mask = jnp.pad(jnp.ones((H, W), jnp.float32), ((1, 1), (1, 1)))
    mask = jnp.pad(mask.reshape(1, n_pad), ((0, 0), (0, Lx - n_pad)))  # (1,Lx)

    kernel = functools.partial(_fire_kernel, Wp=Wp, Lout=Lout)
    kout = pl.pallas_call(
        kernel,
        out_shape=jax.ShapeDtypeStruct((B, Cout, Lout), jnp.float32),
        grid=(B,),
        in_specs=[
            pl.BlockSpec((1, Cin, Lx), lambda b: (b, 0, 0)),
            pl.BlockSpec((1, Lx), lambda b: (0, 0)),
            pl.BlockSpec((Csq, Cin), lambda b: (0, 0)),
            pl.BlockSpec((Csq, 1), lambda b: (0, 0)),
            pl.BlockSpec((Cout, 9 * Csq), lambda b: (0, 0)),
            pl.BlockSpec((Cout, 1), lambda b: (0, 0)),
        ],
        out_specs=pl.BlockSpec((1, Cout, Lout), lambda b: (b, 0, 0)),
        compiler_params=pltpu.CompilerParams(
            dimension_semantics=("parallel",)),
    )(x_flat, mask, w_sq, b_sq, w_comb, b_comb)

    # anchor p = y*Wp + x  ->  reshape to (H, Wp) and keep x < W (already NCHW)
    return kout.reshape(B, Cout, H, Wp)[:, :, :, :W]


# ----------------------------------------------------------------------------
# Pure-JAX reference (for correctness check)
# ----------------------------------------------------------------------------
def fire_reference(x_nchw, sq_w, sq_b, e1_w, e1_b, e3_w, e3_b):
    """Reference using lax.conv. Weights in PyTorch OIHW layout."""
    dn = ('NCHW', 'OIHW', 'NCHW')
    conv = lambda x, w, pad: jax.lax.conv_general_dilated(
        x, w, window_strides=(1, 1), padding=pad, dimension_numbers=dn)
    sq = jax.nn.relu(conv(x_nchw, sq_w, 'VALID') + sq_b[None, :, None, None])
    e1 = jax.nn.relu(conv(sq, e1_w, 'VALID') + e1_b[None, :, None, None])
    e3 = jax.nn.relu(conv(sq, e3_w, [(1, 1), (1, 1)]) + e3_b[None, :, None, None])
    return jnp.concatenate([e1, e3], axis=1)


if __name__ == "__main__":
    # Fire(inplanes=4, squeeze_planes=8, expand1x1_planes=16, expand3x3_planes=16)
    B, Cin, H, W = 2, 4, 16, 16
    Csq, C1, C3 = 8, 16, 16

    key = jax.random.PRNGKey(0)
    ks = jax.random.split(key, 7)
    x = jax.random.normal(ks[0], (B, Cin, H, W), jnp.float32)

    # Deterministic synthetic parameters in PyTorch OIHW layout.
    sq_w = 0.1 * jax.random.normal(ks[1], (Csq, Cin, 1, 1), jnp.float32)
    sq_b = 0.1 * jax.random.normal(ks[2], (Csq,), jnp.float32)
    e1_w = 0.1 * jax.random.normal(ks[3], (C1, Csq, 1, 1), jnp.float32)
    e1_b = 0.1 * jax.random.normal(ks[4], (C1,), jnp.float32)
    e3_w = 0.1 * jax.random.normal(ks[5], (C3, Csq, 3, 3), jnp.float32)
    e3_b = 0.1 * jax.random.normal(ks[6], (C3,), jnp.float32)

    # Repack for the kernel: transposed 1x1 weight, combined expand weight.
    w_sq = sq_w.reshape(Csq, Cin)                     # (Csq, Cin)
    b_sq = sq_b.reshape(Csq, 1)                       # (Csq, 1)
    w_comb = jnp.zeros((C1 + C3, 9 * Csq), jnp.float32)
    # expand1x1 folded into the centre tap (ky=1, kx=1 -> t=4)
    w_comb = w_comb.at[:C1, 4 * Csq:5 * Csq].set(e1_w.reshape(C1, Csq))
    for ky in range(3):
        for kx in range(3):
            t = ky * 3 + kx
            w_comb = w_comb.at[C1:, t * Csq:(t + 1) * Csq].set(e3_w[:, :, ky, kx])
    b_comb = jnp.concatenate([e1_b, e3_b]).reshape(C1 + C3, 1)

    out = jax.block_until_ready(fire_forward(x, w_sq, b_sq, w_comb, b_comb))

    ref = fire_reference(x, sq_w, sq_b, e1_w, e1_b, e3_w, e3_b)
    assert out.shape == (B, C1 + C3, H, W), out.shape
    max_err = float(jnp.max(jnp.abs(out - ref)))
    assert jnp.allclose(out, ref, atol=1e-4, rtol=1e-4), max_err

    print("KERNEL_OK")
</pallas_src>

<mosaic_0001>
module attributes {stable_mosaic.version = 11 : i64} {
  func.func @_fire_kernel(%arg0: i32, %arg1: memref<1x4x384xf32, #tpu.memory_space<vmem>>, %arg2: memref<1x384xf32, #tpu.memory_space<vmem>>, %arg3: memref<8x4xf32, #tpu.memory_space<vmem>>, %arg4: memref<8x1xf32, #tpu.memory_space<vmem>>, %arg5: memref<32x72xf32, #tpu.memory_space<vmem>>, %arg6: memref<32x1xf32, #tpu.memory_space<vmem>>, %arg7: memref<1x32x288xf32, #tpu.memory_space<vmem>>) attributes {dimension_semantics = [#tpu.dimension_semantics<parallel>], iteration_bounds = array<i64: 2>, scalar_prefetch = 0 : i64, scratch_operands = 0 : i64, tpu.core_type = #tpu.core_type<tc>, window_params = [{transform_indices = @transform_0, window_bounds = array<i64: 1, 4, 384>}, {pipeline_mode = #tpu.pipeline_mode<synchronous>, transform_indices = @transform_1, window_bounds = array<i64: 1, 384>}, {pipeline_mode = #tpu.pipeline_mode<synchronous>, transform_indices = @transform_2, window_bounds = array<i64: 8, 4>}, {pipeline_mode = #tpu.pipeline_mode<synchronous>, transform_indices = @transform_3, window_bounds = array<i64: 8, 1>}, {pipeline_mode = #tpu.pipeline_mode<synchronous>, transform_indices = @transform_4, window_bounds = array<i64: 32, 72>}, {pipeline_mode = #tpu.pipeline_mode<synchronous>, transform_indices = @transform_5, window_bounds = array<i64: 32, 1>}, {transform_indices = @transform_6, window_bounds = array<i64: 1, 32, 288>}]} {
    %c0 = arith.constant 0 : index
    %c0_0 = arith.constant 0 : index
    %c0_1 = arith.constant 0 : index
    %0 = vector.load %arg1[%c0, %c0_0, %c0_1] : memref<1x4x384xf32, #tpu.memory_space<vmem>>, vector<1x4x384xf32>
    %1 = vector.shape_cast %0 : vector<1x4x384xf32> to vector<4x384xf32>
    %c0_2 = arith.constant 0 : index
    %c0_3 = arith.constant 0 : index
    %2 = vector.load %arg3[%c0_2, %c0_3] : memref<8x4xf32, #tpu.memory_space<vmem>>, vector<8x4xf32>
    %cst = arith.constant dense<0.000000e+00> : vector<8x384xf32>
    %3 = tpu.matmul %2, %1, %cst {dimension_numbers = #tpu.dot_dimension_numbers<[1], [0], [0], [1], [0, 0, 1, 1], [], []>} : vector<8x4xf32>, vector<4x384xf32>, vector<8x384xf32> -> vector<8x384xf32>
    %c0_4 = arith.constant 0 : index
    %c0_5 = arith.constant 0 : index
    %4 = vector.load %arg4[%c0_4, %c0_5] : memref<8x1xf32, #tpu.memory_space<vmem>>, vector<8x1xf32>
    %5 = vector.broadcast %4 : vector<8x1xf32> to vector<8x384xf32>
    %6 = arith.addf %3, %5 : vector<8x384xf32>
    %cst_6 = arith.constant 0.000000e+00 : f32
    %7 = vector.broadcast %cst_6 : f32 to vector<8x384xf32>
    %8 = arith.maximumf %6, %7 : vector<8x384xf32>
    %c0_7 = arith.constant 0 : index
    %c0_8 = arith.constant 0 : index
    %9 = vector.load %arg2[%c0_7, %c0_8] : memref<1x384xf32, #tpu.memory_space<vmem>>, vector<1x384xf32>
    %10 = vector.broadcast %9 : vector<1x384xf32> to vector<8x384xf32>
    %11 = arith.mulf %8, %10 : vector<8x384xf32>
    %12 = vector.extract_strided_slice %11 {offsets = [0, 0], sizes = [8, 288], strides = [1, 1]} : vector<8x384xf32> to vector<8x288xf32>
    %13 = vector.extract_strided_slice %11 {offsets = [0, 1], sizes = [8, 288], strides = [1, 1]} : vector<8x384xf32> to vector<8x288xf32>
    %14 = vector.extract_strided_slice %11 {offsets = [0, 2], sizes = [8, 288], strides = [1, 1]} : vector<8x384xf32> to vector<8x288xf32>
    %15 = vector.extract_strided_slice %11 {offsets = [0, 18], sizes = [8, 288], strides = [1, 1]} : vector<8x384xf32> to vector<8x288xf32>
    %16 = vector.extract_strided_slice %11 {offsets = [0, 19], sizes = [8, 288], strides = [1, 1]} : vector<8x384xf32> to vector<8x288xf32>
    %17 = vector.extract_strided_slice %11 {offsets = [0, 20], sizes = [8, 288], strides = [1, 1]} : vector<8x384xf32> to vector<8x288xf32>
    %18 = vector.extract_strided_slice %11 {offsets = [0, 36], sizes = [8, 288], strides = [1, 1]} : vector<8x384xf32> to vector<8x288xf32>
    %19 = vector.extract_strided_slice %11 {offsets = [0, 37], sizes = [8, 288], strides = [1, 1]} : vector<8x384xf32> to vector<8x288xf32>
    %20 = vector.extract_strided_slice %11 {offsets = [0, 38], sizes = [8, 288], strides = [1, 1]} : vector<8x384xf32> to vector<8x288xf32>
    %21 = tpu.concatenate %12, %13, %14, %15, %16, %17, %18, %19, %20 in 0 : vector<8x288xf32>, vector<8x288xf32>, vector<8x288xf32>, vector<8x288xf32>, vector<8x288xf32>, vector<8x288xf32>, vector<8x288xf32>, vector<8x288xf32>, vector<8x288xf32> -> vector<72x288xf32>
    %c0_9 = arith.constant 0 : index
    %c0_10 = arith.constant 0 : index
    %22 = vector.load %arg5[%c0_9, %c0_10] : memref<32x72xf32, #tpu.memory_space<vmem>>, vector<32x72xf32>
    %cst_11 = arith.constant dense<0.000000e+00> : vector<32x288xf32>
    %23 = tpu.matmul %22, %21, %cst_11 {dimension_numbers = #tpu.dot_dimension_numbers<[1], [0], [0], [1], [0, 0, 1, 1], [], []>} : vector<32x72xf32>, vector<72x288xf32>, vector<32x288xf32> -> vector<32x288xf32>
    %c0_12 = arith.constant 0 : index
    %c0_13 = arith.constant 0 : index
    %24 = vector.load %arg6[%c0_12, %c0_13] : memref<32x1xf32, #tpu.memory_space<vmem>>, vector<32x1xf32>
    %25 = vector.broadcast %24 : vector<32x1xf32> to vector<32x288xf32>
    %26 = arith.addf %23, %25 : vector<32x288xf32>
    %cst_14 = arith.constant 0.000000e+00 : f32
    %27 = vector.broadcast %cst_14 : f32 to vector<32x288xf32>
    %28 = arith.maximumf %26, %27 : vector<32x288xf32>
    %c0_15 = arith.constant 0 : index
    %c0_16 = arith.constant 0 : index
    %c0_17 = arith.constant 0 : index
    %29 = vector.load %arg7[%c0_15, %c0_16, %c0_17] : memref<1x32x288xf32, #tpu.memory_space<vmem>>, vector<1x32x288xf32>
    %30 = vector.shape_cast %29 : vector<1x32x288xf32> to vector<32x288xf32>
    %31 = vector.shape_cast %28 : vector<32x288xf32> to vector<1x32x288xf32>
    tpu.vector_store %arg7[%c0_15, %c0_16, %c0_17], %31 {strides = array<i32>} : memref<1x32x288xf32, #tpu.memory_space<vmem>>, vector<1x32x288xf32>,
    return
  }
  func.func @transform_0(%arg0: i32) -> (i32, i32, i32) {
    %c0_i32 = arith.constant 0 : i32
    %c0_i32_0 = arith.constant 0 : i32
    %c0_i32_1 = arith.constant 0 : i32
    return %arg0, %c0_i32, %c0_i32_0 : i32, i32, i32
  }
  func.func @transform_1(%arg0: i32) -> (i32, i32) {
    %c0_i32 = arith.constant 0 : i32
    %c0_i32_0 = arith.constant 0 : i32
    %c0_i32_1 = arith.constant 0 : i32
    return %c0_i32, %c0_i32_0 : i32, i32
  }
  func.func @transform_2(%arg0: i32) -> (i32, i32) {
    %c0_i32 = arith.constant 0 : i32
    %c0_i32_0 = arith.constant 0 : i32
    %c0_i32_1 = arith.constant 0 : i32
    return %c0_i32, %c0_i32_0 : i32, i32
  }
  func.func @transform_3(%arg0: i32) -> (i32, i32) {
    %c0_i32 = arith.constant 0 : i32
    %c0_i32_0 = arith.constant 0 : i32
    %c0_i32_1 = arith.constant 0 : i32
    return %c0_i32, %c0_i32_0 : i32, i32
  }
  func.func @transform_4(%arg0: i32) -> (i32, i32) {
    %c0_i32 = arith.constant 0 : i32
    %c0_i32_0 = arith.constant 0 : i32
    %c0_i32_1 = arith.constant 0 : i32
    return %c0_i32, %c0_i32_0 : i32, i32
  }
  func.func @transform_5(%arg0: i32) -> (i32, i32) {
    %c0_i32 = arith.constant 0 : i32
    %c0_i32_0 = arith.constant 0 : i32
    %c0_i32_1 = arith.constant 0 : i32
    return %c0_i32, %c0_i32_0 : i32, i32
  }
  func.func @transform_6(%arg0: i32) -> (i32, i32, i32) {
    %c0_i32 = arith.constant 0 : i32
    %c0_i32_0 = arith.constant 0 : i32
    %c0_i32_1 = arith.constant 0 : i32
    return %arg0, %c0_i32, %c0_i32_0 : i32, i32, i32
  }
}

</mosaic_0001>

<bundles_post_ra>
// kernel: fire_forward.1
= control target key start
LH: loop header
LB: loop body
LE: loop exit
PB: predicated region body
PF: predicated region fallthrough
CT: control target
= control target key end

     0   :  { %s1044_s21 = smov 0   ;;  %s1150_s0 = inlined_call_operand.vmem [shape: f32[2,4,384], index: 0, kind: input, shape index: {}]   ;;  %s1151_s1 = inlined_call_operand.vmem [shape: f32[1,384], index: 1, kind: input, shape index: {}]   ;;  %s1152_s2 = inlined_call_operand.vmem [shape: f32[8,4], index: 2, kind: input, shape index: {}]   ;;  %s1153_s3 = inlined_call_operand.vmem [shape: f32[8,1], index: 3, kind: input, shape index: {}]   ;;  %s1154_s4 = inlined_call_operand.vmem [shape: f32[32,72], index: 4, kind: input, shape index: {}]   ;;  %s1155_s5 = inlined_call_operand.vmem [shape: f32[32,1], index: 5, kind: input, shape index: {}]   ;;  %s1156_s6 = inlined_call_operand.vmem [shape: f32[2,32,288], index: 6, kind: output, shape index: {}]  }
   0x1 LB: > { %s833_s22 = sadd.s32 4294967295, %s996_s21   ;;  %p837_p0 = scmp.ge.s32.totalorder %s996_s21, 1  ;;  %s996_s21 = sphi %s1044_s21, %s16_s21  }
   0x2   : > { %p212_p1 = scmp.lt.s32.totalorder %s996_s21, 3 }
   0x4   : > { %p213_p2 = pnand %p837_p0, %p212_p1 }
   0x5   : > { %p242_p3 = scmp.lt.s32.totalorder (!%p213_p2), %s833_s22, 1  ;;  %v998_v0 = vmov (!%p213_p2), 0.0   ;;  %v255_v1 = vld [vmem:[%s1153_s3] sm:$0xff] (!%p213_p2)  ;;  %v999_v2 = vmov (!%p213_p2), 0   ;;  %vm268_vm0 = vcmask (!%p213_p2), 1043456   ;;  %vm264_vm1 = vcmask (!%p213_p2), 31744  }
   0x6   : > { %216 = sbr.rel (%p213_p2) target bundleno = 620 (0x26c), region = 44  ;;  %339 = vmatprep.mubr.f32.mxu1 (!%p213_p2), %v998_v0  ;;  %643 = vmatprep.mubr.f32.mxu0 (!%p213_p2), %v998_v0  ;;  %v254_v5 = vld [vmem:[%s1152_s2] sm:$0xff] (!%p213_p2)  ;;  %vm1000_vm2 = vmmov (!%p213_p2), 0   ;;  %v421_v7 = vlaneseq (!%p213_p2)  ;;  %s1001_s9 = smov (!%p213_p2), 110   ;;  %vm566_vm3 = vcmask (!%p213_p2), 588800   ;;  %v544_v33 = vld [vmem:[%s1155_s5 + $0x10] sm:$0xff] (!%p213_p2) }
   0x7   : > { %952 = vset.pattern.permute.xlu0 (!%p213_p2), %v999_v2  ;;  %988 = vset.pattern.permute.xlu1 (!%p213_p2), %v999_v2  ;;  %v419_v11 = vld [vmem:[%s1151_s1] sm:$0x7] (!%p213_p2)  ;;  %s1002_s10 = smov (!%p213_p2), 127   ;;  %s1003_s11 = smov (!%p213_p2), 108   ;;  %v543_v34 = vld [vmem:[%s1155_s5 + $0x8] sm:$0xff] (!%p213_p2)  ;;  %v545_v35 = vld [vmem:[%s1155_s5 + $0x18] sm:$0xff] (!%p213_p2) }
   0x8   : > { %258 = vperm.xlu0 (!%p213_p2), %952, %v255_v1   ;;  %v422_v8 = vshrl.u32 (!%p213_p2), %v421_v7, 7  ;;  %s1004_s12 = smov (!%p213_p2), 126   ;;  %s1005_s13 = smov (!%p213_p2), 109   ;;  %v1082_v31 = vld [vmem:[%s1154_s4] sm:$0xff] (!%p213_p2)  ;;  %vm448_vm4 = vcmask (!%p213_p2), 1039360   ;;  %vm472_vm5 = vcmask (!%p213_p2), 900096  }
   0x9   : > { %s1006_s14 = smov (!%p213_p2), 92   ;;  %s1007_s15 = smov (!%p213_p2), 91   ;;  %v542_v32 = vld [vmem:[%s1155_s5] sm:$0xff] (!%p213_p2)  ;;  %vm460_vm6 = vcmask (!%p213_p2), 1031168   ;;  %vm496_vm7 = vcmask (!%p213_p2), 883712   ;;  %vm484_vm8 = vcmask (!%p213_p2), 891904  }
   0xa   : > { %v423_v9 = vsub.s32 (!%p213_p2), 0, %v422_v8  ;;  %v431_v16 = vsub.s32 (!%p213_p2), 2, %v422_v8  ;;  %v427_v19 = vsub.s32 (!%p213_p2), 1, %v422_v8  ;;  %s1008_s18 = smov (!%p213_p2), 90   ;;  %vm520_vm9 = vcmask (!%p213_p2), 744448  }
   0xb   : > { %vm508_vm10 = vcmask (!%p213_p2), 752640   ;;  %vm532_vm11 = vcmask (!%p213_p2), 736256   ;;  %vm767_vm12 = vcmask (!%p213_p2), 261120  }
   0xc   : > { %v424_v14 = vrot.slane (!%p213_p2), %v419_v11, %v423_v9  ;;  %v432_v23 = vrot.slane (!%p213_p2), %v419_v11, %v431_v16  ;;  %v428_v26 = vrot.slane (!%p213_p2), %v419_v11, %v427_v19 }
   0xd   : > { %s1158_s22 = smov (!%p242_p3, %s833_s22), 1 }
   0xe   : > { %s931_s25 = smul.u32 12, %s1158_s22 }
  0x10   : > { %s246_s28 = scalar_lea.vmem %s1150_s0, %s931_s25 }
  0x11   : > { %v252_v3 = vld [vmem:[%s246_s28] sm:$0xff]  ;;  %v253_v6 = vld [vmem:[%s246_s28 + $0x8] sm:$0xf] }
  0x12   : > { %v263_v4 = vcombine.high %v252_v3, %v252_v3 }
  0x14   : > { %840 = vmatprep.subr.msk.mxu1 %vm268_vm0, %v263_v4 }
  0x15   : > { %841 = vmatpush1.msk.msra.mxu1 %vm268_vm0, %v252_v3 }
  0x16   : > { %842 = vmatmul.mubr.msk.f32.vlgmr.msra.gmra.mrb[0].mxu1 %vm264_vm1, %v254_v5  ;;  %870 = vmatprep.subr.mxu1 %v998_v0 }
  0x17   : > { %871 = vmatpush3.msk.msra.mxu1 %vm268_vm0, %v253_v6  ;;  %872 = vmatprep.mubr.msk.f32.mxu1 %vm1000_vm2, %v998_v0 }
  0x1a   : > { %873 = vmatmul.mubr.msk.f32.vlgmr.msra.gmra.mrb[2].mxu1 %vm264_vm1, %v254_v5 }
  0x1b   : > { %893 = vmatprep.mubr.msk.f32.mxu1 %vm566_vm3, %v1082_v31 }
  0x87   : > { %v259_v10 = vpop.permute.xlu0 %258 }
  0xe9   : > { %v341_v12 = vpop.f32.mrb[0].mxu1 }
  0xea   : > { %v342_v13 = vadd.f32 %v341_v12, %v259_v10  ;;  %v343_v15 = vpop.f32.mrb[1].mxu1 }
  0xeb   : > { %v344_v18 = vadd.f32 %v343_v15, %v259_v10 }
  0xec   : > { %v416_v17 = vmax.f32 %v342_v13, 0.0 }
  0xed   : > { %v412_v20 = vpop.f32.mrb[2].mxu1  ;;  %v417_v25 = vmax.f32 %v344_v18, 0.0 }
  0xee   : > { %v1071_v21 = vmul.f32 %v424_v14, %v416_v17  ;;  %v413_v22 = vadd.f32 %v412_v20, %v259_v10  ;;  %v874_v24 = vpop.f32.mrb[3].mxu1 }
  0xef   : > { %v437_v29 = vmul.f32 %v428_v26, %v417_v25 }
  0xf0   : > { %v418_v27 = vmax.f32 %v413_v22, 0.0  ;;  %466 = vrot.lane.b32.xlu0 %v1071_v21, %s1001_s9  ;;  %442 = vrot.lane.b32.xlu1 %v1071_v21, %s1002_s10 }
  0xf2   : > { %v438_v28 = vmul.f32 %v432_v23, %v418_v27 }
  0xf4   : > { %490 = vrot.lane.b32.xlu0 %v1071_v21, %s1003_s11  ;;  %454 = vrot.lane.b32.xlu1 %v1071_v21, %s1004_s12  ;;  %v953_v30 = vpack.i.bf16 %v438_v28, %v437_v29 }
  0xf8   : > { %954 = vrot.lane.b32.xlu0 %v953_v30, %s1002_s10  ;;  %478 = vrot.lane.b32.xlu1 %v1071_v21, %s1005_s13 }
  0xfc   : > { %964 = vrot.lane.b32.xlu0 %v953_v30, %s1001_s9  ;;  %502 = vrot.lane.b32.xlu1 %v1071_v21, %s1006_s14 }
 0x100   : > { %974 = vrot.lane.b32.xlu0 %v953_v30, %s1003_s11  ;;  %959 = vrot.lane.b32.xlu1 %v953_v30, %s1004_s12  ;;  %s932_s11 = smul.u32 96, %s1158_s22 }
 0x104   : > { %984 = vrot.lane.b32.xlu0 %v953_v30, %s1007_s15  ;;  %969 = vrot.lane.b32.xlu1 %v953_v30, %s1005_s13 }
 0x108   : > { %514 = vrot.lane.b32.xlu0 %v1071_v21, %s1007_s15  ;;  %979 = vrot.lane.b32.xlu1 %v953_v30, %s1006_s14  ;;  %s1129_s14 = scalar_lea.vmem %s1156_s6, %s932_s11 }
 0x10c   : > { %530 = vrot.lane.b32.xlu0 %v438_v28, %s1008_s18  ;;  %528 = vrot.lane.b32.xlu1 %v437_v29, %s1008_s18 }
 0x110   : > { %548 = vperm.xlu0 %952, %v542_v32   ;;  %526 = vrot.lane.b32.xlu1 %v1071_v21, %s1008_s18  ;;  %v539_v32 = vld [vmem:[%s1154_s4 + $0x8] sm:$0xff] }
 0x114   : > { %558 = vperm.xlu0 %952, %v544_v33   ;;  %553 = vperm.xlu1 %988, %v543_v34   ;;  %v540_v34 = vld [vmem:[%s1154_s4 + $0x10] sm:$0xff] }
 0x118   : > { %563 = vperm.xlu1 %988, %v545_v35   ;;  %v541_v35 = vld [vmem:[%s1154_s4 + $0x18] sm:$0xff] }
 0x162   : > { %v467_v36 = vpop.permute.xlu0 %466  ;;  %v443_v37 = vpop.permute.xlu1 %442 }
 0x166   : > { %v491_v38 = vpop.permute.xlu0 %490  ;;  %v455_v39 = vpop.permute.xlu1 %454 }
 0x16a   : > { %v955_v40 = vpop.permute.xlu0 %954  ;;  %v479_v41 = vpop.permute.xlu1 %478 }
 0x16b   : > { %v957_v42 = vunpack.i.h.bf16 %v955_v40  ;;  %v956_v43 = vunpack.i.l.bf16 %v955_v40 }
 0x16d   : > { %v915_v44 = vpack.c.bf16 %v957_v42, %v438_v28  ;;  %v450_v45 = vsel %vm448_vm4, %v956_v43, %v957_v42  ;;  %v449_v46 = vsel %vm448_vm4, %v443_v37, %v956_v43 }
 0x16e   : > { %v965_v47 = vpop.permute.xlu0 %964  ;;  %v503_v48 = vpop.permute.xlu1 %502  ;;  %v899_v49 = vpack.c.bf16 %v450_v45, %v437_v29  ;;  %v901_v50 = vpack.c.bf16 %v449_v46, %v1071_v21 }
 0x16f   : > { %916 = vmatprep.subr.bf16.mxu1 %v915_v44  ;;  %v967_v51 = vunpack.i.h.bf16 %v965_v47  ;;  %v966_v52 = vunpack.i.l.bf16 %v965_v47 }
 0x170   : > { %900 = vmatprep.subr.bf16.mxu0 %v899_v49  ;;  %918 = vmatpush3.bf16.msra.mxu1 %v915_v44 }
 0x171   : > { %902 = vmatpush1.bf16.msra.mxu0 %v901_v50  ;;  %v474_v59 = vsel %vm472_vm5, %v966_v52, %v967_v51  ;;  %v473_v63 = vsel %vm472_vm5, %v467_v36, %v966_v52 }
 0x172   : > { %v975_v53 = vpop.permute.xlu0 %974  ;;  %v960_v54 = vpop.permute.xlu1 %959 }
 0x173   : > { %v962_v55 = vunpack.i.h.bf16 %v960_v54  ;;  %v961_v56 = vunpack.i.l.bf16 %v960_v54  ;;  %v977_v57 = vunpack.i.h.bf16 %v975_v53  ;;  %v976_v58 = vunpack.i.l.bf16 %v975_v53 }
 0x175   : > { %v919_v60 = vpack.c.bf16 %v967_v51, %v962_v55  ;;  %v462_v61 = vsel %vm460_vm6, %v961_v56, %v962_v55  ;;  %v461_v62 = vsel %vm460_vm6, %v455_v39, %v961_v56  ;;  %v498_v9 = vsel %vm496_vm7, %v976_v58, %v977_v57 }
 0x176   : > { %v985_v1 = vpop.permute.xlu0 %984  ;;  %v970_v2 = vpop.permute.xlu1 %969  ;;  %v903_v3 = vpack.c.bf16 %v474_v59, %v462_v61  ;;  %v905_v4 = vpack.c.bf16 %v473_v63, %v461_v62  ;;  %v497_v13 = vsel %vm496_vm7, %v491_v38, %v976_v58 }
 0x177   : > { %v972_v5 = vunpack.i.h.bf16 %v970_v2  ;;  %v971_v6 = vunpack.i.l.bf16 %v970_v2  ;;  %920 = vmatprep.subr.bf16.mxu1 %v919_v60  ;;  %v987_v7 = vunpack.i.h.bf16 %v985_v1  ;;  %v986_v8 = vunpack.i.l.bf16 %v985_v1 }
 0x178   : > { %904 = vmatprep.subr.bf16.mxu0 %v903_v3  ;;  %922 = vmatpush3.bf16.msra.mxu1 %v919_v60 }
 0x179   : > { %v923_v10 = vpack.c.bf16 %v977_v57, %v972_v5  ;;  %906 = vmatpush1.bf16.msra.mxu0 %v905_v4  ;;  %v486_v11 = vsel %vm484_vm8, %v971_v6, %v972_v5  ;;  %v485_v12 = vsel %vm484_vm8, %v479_v41, %v971_v6  ;;  %v522_v20 = vsel %vm520_vm9, %v986_v8, %v987_v7 }
 0x17a   : > { %v515_v14 = vpop.permute.xlu0 %514  ;;  %v980_v15 = vpop.permute.xlu1 %979  ;;  %v907_v16 = vpack.c.bf16 %v498_v9, %v486_v11  ;;  %v909_v17 = vpack.c.bf16 %v497_v13, %v485_v12 }
 0x17b   : > { %v982_v18 = vunpack.i.h.bf16 %v980_v15  ;;  %v981_v19 = vunpack.i.l.bf16 %v980_v15  ;;  %924 = vmatprep.subr.bf16.mxu1 %v923_v10  ;;  %v521_v21 = vsel %vm520_vm9, %v515_v14, %v986_v8 }
 0x17c   : > { %908 = vmatprep.subr.bf16.mxu0 %v907_v16  ;;  %926 = vmatpush3.bf16.msra.mxu1 %v923_v10 }
 0x17d   : > { %v927_v22 = vpack.c.bf16 %v987_v7, %v982_v18  ;;  %910 = vmatpush1.bf16.msra.mxu0 %v909_v17  ;;  %v510_v23 = vsel %vm508_vm10, %v981_v19, %v982_v18  ;;  %v509_v24 = vsel %vm508_vm10, %v503_v48, %v981_v19 }
 0x17e   : > { %v531_v25 = vpop.permute.xlu0 %530  ;;  %v529_v26 = vpop.permute.xlu1 %528  ;;  %v911_v27 = vpack.c.bf16 %v522_v20, %v510_v23  ;;  %v913_v28 = vpack.c.bf16 %v521_v21, %v509_v24 }
 0x17f   : > { %928 = vmatprep.subr.bf16.mxu1 %v927_v22  ;;  %v534_v29 = vsel %vm532_vm11, %v529_v26, %v531_v25 }
 0x180   : > { %912 = vmatprep.subr.bf16.mxu0 %v911_v27  ;;  %930 = vmatpush3.bf16.msra.mxu1 %v927_v22 }
 0x181   : > { %914 = vmatpush1.bf16.msra.mxu0 %v913_v28  ;;  %891 = vmatprep.subr.mxu1 %v531_v25 }
 0x182   : > { %v527_v30 = vpop.permute.xlu1 %526  ;;  %595 = vmatprep.subr.mxu0 %v534_v29 }
 0x183   : > { %v533_v33 = vsel %vm532_vm11, %v527_v30, %v529_v26 }
 0x184   : > { %892 = vmatpush3.msra.mxu1 %v531_v25 }
 0x185   : > { %596 = vmatpush1.msra.mxu0 %v533_v33  ;;  %894 = vmatmul.mubr.msk.f32.vlgmr.msra.gmra.mrb[4].mxu1 %vm566_vm3, %v539_v32 }
 0x186   : > { %845 = vmatmul.mubr.msk.f32.vlgmr.msra.gmra.mrb[0].mxu0 %vm566_vm3, %v1082_v31  ;;  %896 = vmatprep.mubr.msk.f32.mxu1 %vm566_vm3, %v540_v34 }
 0x187   : > { %649 = vmatprep.mubr.f32.mxu0 %v998_v0 }
 0x189   : > { %897 = vmatmul.mubr.msk.f32.gmra.mrb[6].mxu1 %vm566_vm3, %v541_v35 }
 0x18a   : > { %846 = vmatmul.mubr.msk.f32.gmra.mrb[2].mxu0 %vm566_vm3, %v539_v32 }
 0x18b   : > { %655 = vmatprep.mubr.f32.mxu0 %v998_v0 }
 0x18e   : > { %847 = vmatmul.mubr.msk.f32.gmra.mrb[4].mxu0 %vm566_vm3, %v540_v34 }
 0x18f   : > { %661 = vmatprep.mubr.f32.mxu0 %v998_v0  ;;  %v549_v36 = vpop.permute.xlu0 %548 }
 0x192   : > { %848 = vmatmul.mubr.msk.f32.gmra.mrb[6].mxu0 %vm566_vm3, %v541_v35 }
 0x193   : > { %v554_v31 = vpop.permute.xlu1 %553  ;;  %v559_v46 = vpop.permute.xlu0 %558 }
 0x197   : > { %v564_v44 = vpop.permute.xlu1 %563 }
 0x258   : > { %v895_v37 = vpop.f32.mrb[4].mxu1 }
 0x259   : > { %v645_v38 = vpop.f32.mrb[0].mxu0  ;;  %v734_v39 = vpop.f32.mrb[5].mxu1  ;;  %v740_v40 = vadd.f32 %v895_v37, %v554_v31 }
 0x25a   : > { %v646_v41 = vadd.f32 %v645_v38, %v549_v36  ;;  %v735_v42 = vadd.f32 %v734_v39, %v549_v36  ;;  %v647_v43 = vpop.f32.mrb[1].mxu0 }
 0x25b   : > { %v648_v0 = vadd.f32 %v647_v43, %v549_v36  ;;  %v758_v45 = vmax.f32 %v740_v40, 0.0 }
 0x25c   : > { %v753_v47 = vmax.f32 %v646_v41, 0.0  ;;  %v755_v48 = vmax.f32 %v735_v42, 0.0  ;;  %v898_v49 = vpop.f32.mrb[6].mxu1 }
 0x25d   : > { %v754_v50 = vmax.f32 %v648_v0, 0.0  ;;  %771 = vst.msk [vmem:[%s1129_s14 + $0x28] sm:$0xff] %vm767_vm12, %v758_v45  ;;  %v651_v51 = vpop.f32.mrb[2].mxu0  ;;  %v744_v52 = vpop.f32.mrb[7].mxu1  ;;  %v750_v53 = vadd.f32 %v898_v49, %v564_v44 }
 0x25e   : > { %765 = vst [vmem:[%s1129_s14] sm:$0xff] %v753_v47  ;;  %768 = vst.msk [vmem:[%s1129_s14 + $0x10] sm:$0xff] %vm767_vm12, %v755_v48  ;;  %v652_v54 = vadd.f32 %v651_v51, %v554_v31  ;;  %v745_v55 = vadd.f32 %v744_v52, %v559_v46  ;;  %v653_v56 = vpop.f32.mrb[3].mxu0 }
 0x25f   : > { %766 = vst [vmem:[%s1129_s14 + $0x8] sm:$0xff] %v754_v50  ;;  %v654_v57 = vadd.f32 %v653_v56, %v554_v31  ;;  %v764_v58 = vmax.f32 %v750_v53, 0.0 }
 0x260   : > { %v756_v59 = vmax.f32 %v652_v54, 0.0  ;;  %v761_v60 = vmax.f32 %v745_v55, 0.0 }
 0x261   : > { %v757_v61 = vmax.f32 %v654_v57, 0.0  ;;  %v657_v62 = vpop.f32.mrb[4].mxu0  ;;  %777 = vst.msk [vmem:[%s1129_s14 + $0x58] sm:$0xff] %vm767_vm12, %v764_v58 }
 0x262   : > { %769 = vst [vmem:[%s1129_s14 + $0x18] sm:$0xff] %v756_v59  ;;  %774 = vst.msk [vmem:[%s1129_s14 + $0x40] sm:$0xff] %vm767_vm12, %v761_v60  ;;  %v658_v63 = vadd.f32 %v657_v62, %v559_v46  ;;  %v659_v1 = vpop.f32.mrb[5].mxu0 }
 0x263   : > { %770 = vst [vmem:[%s1129_s14 + $0x20] sm:$0xff] %v757_v61  ;;  %v660_v2 = vadd.f32 %v659_v1, %v559_v46 }
 0x264   : > { %v759_v3 = vmax.f32 %v658_v63, 0.0 }
 0x265   : > { %v760_v4 = vmax.f32 %v660_v2, 0.0  ;;  %v663_v5 = vpop.f32.mrb[6].mxu0 }
 0x266   : > { %772 = vst [vmem:[%s1129_s14 + $0x30] sm:$0xff] %v759_v3  ;;  %v664_v6 = vadd.f32 %v663_v5, %v564_v44  ;;  %v665_v7 = vpop.f32.mrb[7].mxu0 }
 0x267   : > { %773 = vst [vmem:[%s1129_s14 + $0x38] sm:$0xff] %v760_v4  ;;  %v666_v8 = vadd.f32 %v665_v7, %v564_v44 }
 0x268   : > { %v762_v9 = vmax.f32 %v664_v6, 0.0 }
 0x269   : > { %v763_v10 = vmax.f32 %v666_v8, 0.0 }
 0x26a   : > { %775 = vst [vmem:[%s1129_s14 + $0x48] sm:$0xff] %v762_v9 }
 0x26b   : > { %776 = vst [vmem:[%s1129_s14 + $0x50] sm:$0xff] %v763_v10 }
 0x26c PF: > { %s16_s21 = sadd.s32 1, %s996_s21  }
 0x26d   : > { %p13_p4 = scmp.ge.s32.totalorder %s16_s21, 4  }
 0x26f   :  { %15 = sbr.rel (!%p13_p4) target bundleno = 1 (0x1), region = 74 }

</bundles_post_ra>
